<compile_context>
chip_gen: v7x
topology: tpu7x:2x2x1
jax: 0.10.0
libtpu: 0.0.40
codegen_flags: <defaults>
</compile_context>

<pallas_src>
import functools
import math

import numpy as np
import jax
import jax.numpy as jnp
from jax.experimental import pallas as pl
from jax.experimental.pallas import tpu as pltpu


# ----------------------------------------------------------------------------
# Clenshaw-Curtis quadrature weights / nodes (matches the UMNN reference code).
# ----------------------------------------------------------------------------
def compute_cc_weights(nb_steps):
    lam = np.arange(0, nb_steps + 1, 1).reshape(-1, 1).astype(np.float64)
    lam = np.cos((lam @ lam.T) * math.pi / nb_steps)
    lam[:, 0] = 0.5
    lam[:, -1] = 0.5 * lam[:, -1]
    lam = lam * 2.0 / nb_steps
    W = np.arange(0, nb_steps + 1, 1).reshape(-1, 1)
    W[np.arange(1, nb_steps + 1, 2)] = 0
    W = 2.0 / (1 - W ** 2)
    W[0] = 1
    W[np.arange(1, nb_steps + 1, 2)] = 0
    cc_weights = (lam.T @ W).astype(np.float32)                    # (T, 1)
    steps = np.cos(
        np.arange(0, nb_steps + 1, 1).reshape(-1, 1) * math.pi / nb_steps
    ).astype(np.float32)                                           # (T, 1)
    return cc_weights, steps


def _round_up(v, m):
    return ((v + m - 1) // m) * m


@functools.lru_cache(maxsize=None)
def _quad_table(nb_steps, t_pad):
    """Packed (2, t_pad) table: row 0 = CC nodes (padded with -1 -> t=0),
    row 1 = CC weights (padded with 0 -> no contribution)."""
    ccw, steps = compute_cc_weights(nb_steps)
    T = nb_steps + 1
    quad = np.zeros((2, t_pad), np.float32)
    quad[0, :T] = steps[:, 0]
    quad[0, T:] = -1.0
    quad[1, :T] = ccw[:, 0]
    return quad


# ----------------------------------------------------------------------------
# Pallas kernel: one batch block, all quadrature points, full integrand MLP,
# Clenshaw-Curtis reduction and the +h offset.
# ----------------------------------------------------------------------------
def _monotonic_kernel(x_ref, h_ref, quad_ref, w1_ref, w2t_ref, w3_ref, b_ref,
                      out_ref, *, h1, h2, out_d, dh):
    bb = x_ref.shape[0]
    x = x_ref[...]                                 # (bb, 1)
    hcond = h_ref[...]                             # (bb, dh)
    steps = quad_ref[0:1, :]                       # (1, tp)   CC nodes (padded)
    ccw = quad_ref[1:2, :]                         # (1, tp)   CC weights (0-padded)
    w1 = w1_ref[...]                               # (in_d, h1)
    w2t = w2t_ref[...]                             # (h2, h1)  = W2^T
    w3 = w3_ref[...]                               # (h2, out_d)
    b1 = b_ref[0:1, :h1]                           # (1, h1)
    b2 = b_ref[1:2, :h2]                           # (1, h2)
    b3 = b_ref[2:3, :out_d]                        # (1, out_d)

    # Quadrature nodes in [0, x]:  t[b, s] = x[b] * (steps[s] + 1) / 2   (lane-dense).
    t = x * (steps + 1.0) * 0.5                    # (bb, tp)

    # ---- Layer 1: K = in_d is tiny -> VPU broadcast-FMA, no MXU ----------------
    hw = b1                                        # h / bias contribution, (1|bb, h1)
    for d in range(dh):
        hw = hw + hcond[:, d:d + 1] * w1[1 + d:2 + d, :]
    a1 = t[:, None, :] * w1[0:1, :][:, :, None] + hw[:, :, None]
    a1 = jnp.maximum(a1, 0.0)                      # (bb, h1, tp), tp on lanes

    # ---- Layer 2: the only MXU matmul, batched (h2,h1)@(h1,tp) -----------------
    w2b = jnp.broadcast_to(w2t[None, :, :], (bb, h2, h1))
    a2 = jnp.einsum('bij,bjs->bis', w2b, a1,
                    preferred_element_type=jnp.float32)            # (bb, h2, tp)
    a2 = jnp.maximum(a2 + b2[:, :, None], 0.0)

    # ---- Layer 3 (N = out_d tiny -> VPU mul + sublane reduce), ELU+1, CC sum ---
    scale = x * 0.5                                # (x - x0)/2 with x0 = 0
    cols = []
    for o in range(out_d):
        z = jnp.sum(a2 * w3[:, o:o + 1][None, :, :], axis=1) + b3[:, o:o + 1]  # (bb,tp)
        # ELU(z) + 1 == where(z > 0, z + 1, exp(z))  -- exact, no expm1 cancellation.
        f = jnp.where(z > 0.0, z + 1.0, jnp.exp(z))
        cols.append(jnp.sum(f * ccw, axis=-1, keepdims=True) * scale)          # (bb,1)
    integ = cols[0] if out_d == 1 else jnp.concatenate(cols, axis=1)

    # out = integral_0^x integrand(t, h) dt + h   (offset = h in the reference forward)
    out_ref[...] = integ + hcond


# ----------------------------------------------------------------------------
# Wrapper: batch padding / blocking, packed operands, pallas_call.
# ----------------------------------------------------------------------------
@functools.partial(jax.jit, static_argnames=("nb_steps", "block_b"))
def monotonic_nn_forward(x, h, params, nb_steps=50, block_b=128):
    W1, b1, W2, b2, W3, b3 = params
    B = x.shape[0]
    dh = h.shape[1]
    in_d, h1 = W1.shape
    h2 = W2.shape[1]
    out_d = W3.shape[1]
    out_cols = max(out_d, dh)                      # broadcast of integral + h
    T = nb_steps + 1
    tp = _round_up(T, 128)                         # quadrature axis padded onto lanes

    quad = jnp.asarray(_quad_table(nb_steps, tp))  # (2, tp) constant

    # Pack biases into one operand (rows: b1, b2, b3), pre-transpose W2 once.
    hmax = max(h1, h2, out_d)
    bias = jnp.zeros((3, hmax), jnp.float32)
    bias = bias.at[0, :h1].set(b1[0].astype(jnp.float32))
    bias = bias.at[1, :h2].set(b2[0].astype(jnp.float32))
    bias = bias.at[2, :out_d].set(b3[0].astype(jnp.float32))
    w2t = W2.T.astype(jnp.float32)                 # (h2, h1)

    # Batch blocking: block rows multiple of 8; pad B up to a whole number of blocks.
    bb = min(block_b, _round_up(B, 8))
    bb = max(8, (bb // 8) * 8)
    bp = _round_up(B, bb)
    xf = x.astype(jnp.float32)
    hf = h.astype(jnp.float32)
    if bp != B:
        xf = jnp.zeros((bp, 1), jnp.float32).at[:B].set(xf)
        hf = jnp.zeros((bp, dh), jnp.float32).at[:B].set(hf)

    # Note: the PyTorch forward also computes `out = self.net(h)` but never uses it
    # (dead code), so the conditioner network is omitted here.
    # TODO(synk): MonotonicNN.inverse (root-finding / inverse integral) not implemented.

    kernel = functools.partial(_monotonic_kernel, h1=h1, h2=h2, out_d=out_d, dh=dh)

    out = pl.pallas_call(
        kernel,
        out_shape=jax.ShapeDtypeStruct((bp, out_cols), jnp.float32),
        grid=(bp // bb,),
        in_specs=[
            pl.BlockSpec((bb, 1), lambda i: (i, 0)),            # x block
            pl.BlockSpec((bb, dh), lambda i: (i, 0)),           # h block
            pl.BlockSpec((2, tp), lambda i: (0, 0)),            # quadrature table (resident)
            pl.BlockSpec((in_d, h1), lambda i: (0, 0)),         # W1
            pl.BlockSpec((h2, h1), lambda i: (0, 0)),           # W2^T
            pl.BlockSpec((h2, out_d), lambda i: (0, 0)),        # W3
            pl.BlockSpec((3, hmax), lambda i: (0, 0)),          # packed biases
        ],
        out_specs=pl.BlockSpec((bb, out_cols), lambda i: (i, 0)),
        compiler_params=pltpu.CompilerParams(
            dimension_semantics=("parallel",)),
    )(xf, hf, quad, W1.astype(jnp.float32), w2t, W3.astype(jnp.float32), bias)
    return out[:B]


# ----------------------------------------------------------------------------
# Pure-JAX reference (full f32 precision) for the correctness check.
# ----------------------------------------------------------------------------
def reference_forward(x, h, params, nb_steps=50):
    W1, b1, W2, b2, W3, b3 = params
    B = x.shape[0]
    T = nb_steps + 1
    ccw_np, steps_np = compute_cc_weights(nb_steps)
    ccw = jnp.asarray(ccw_np)                      # (T, 1)
    steps = jnp.asarray(steps_np)                  # (T, 1)
    x0 = jnp.zeros_like(x)
    X_steps = x0[:, None, :] + (x - x0)[:, None, :] * (steps[None, :, :] + 1.0) / 2.0
    h_steps = jnp.broadcast_to(h[:, None, :], (B, T, h.shape[1]))
    inp = jnp.concatenate(
        [X_steps.reshape(B * T, -1), h_steps.reshape(B * T, -1)], axis=1)
    hp = jax.lax.Precision.HIGHEST
    a1 = jnp.maximum(jnp.dot(inp, W1, precision=hp) + b1, 0.0)
    a2 = jnp.maximum(jnp.dot(a1, W2, precision=hp) + b2, 0.0)
    z = jnp.dot(a2, W3, precision=hp) + b3
    f = jnp.where(z > 0, z, jnp.exp(z) - 1.0) + 1.0
    dzs = f.reshape(B, T, -1) * ccw[None, :, :]
    z_est = dzs.sum(1)
    return z_est * (x - x0) / 2.0 + h


if __name__ == "__main__":
    key = jax.random.PRNGKey(0)
    in_d, hidden_layers, out_d, nb_steps = 2, [32, 32], 1, 50
    B = 8

    keys = jax.random.split(key, 6)

    def linear_init(k, fan_in, fan_out):
        bound = 1.0 / math.sqrt(fan_in)
        kw, kb = jax.random.split(k)
        W = jax.random.uniform(kw, (fan_in, fan_out), jnp.float32, -bound, bound)
        b = jax.random.uniform(kb, (1, fan_out), jnp.float32, -bound, bound)
        return W, b

    # IntegrandNN parameters: in_d -> 32 -> 32 -> out_d
    W1, b1 = linear_init(keys[0], in_d, hidden_layers[0])
    W2, b2 = linear_init(keys[1], hidden_layers[0], hidden_layers[1])
    W3, b3 = linear_init(keys[2], hidden_layers[1], out_d)
    params = (W1, b1, W2, b2, W3, b3)

    # Inputs: x is the (B, 1) integration variable, h the (B, in_d-1) conditioner.
    x = jax.random.normal(keys[3], (B, 1), jnp.float32)
    h = jax.random.normal(keys[4], (B, in_d - 1), jnp.float32)

    out = jax.block_until_ready(monotonic_nn_forward(x, h, params, nb_steps=nb_steps))
    ref = jax.block_until_ready(reference_forward(x, h, params, nb_steps))
    np.testing.assert_allclose(np.asarray(out), np.asarray(ref),
                               rtol=2e-3, atol=2e-3)

    print("KERNEL_OK")
</pallas_src>

<mosaic_0001>
module attributes {stable_mosaic.version = 11 : i64} {
  func.func @_monotonic_kernel(%arg0: i32, %arg1: memref<8x1xf32, #tpu.memory_space<vmem>>, %arg2: memref<8x1xf32, #tpu.memory_space<vmem>>, %arg3: memref<2x128xf32, #tpu.memory_space<vmem>>, %arg4: memref<2x32xf32, #tpu.memory_space<vmem>>, %arg5: memref<32x32xf32, #tpu.memory_space<vmem>>, %arg6: memref<32x1xf32, #tpu.memory_space<vmem>>, %arg7: memref<3x32xf32, #tpu.memory_space<vmem>>, %arg8: memref<8x1xf32, #tpu.memory_space<vmem>>) attributes {dimension_semantics = [#tpu.dimension_semantics<parallel>], iteration_bounds = array<i64: 1>, scalar_prefetch = 0 : i64, scratch_operands = 0 : i64, tpu.core_type = #tpu.core_type<tc>, window_params = [{transform_indices = @transform_0, window_bounds = array<i64: 8, 1>}, {transform_indices = @transform_1, window_bounds = array<i64: 8, 1>}, {pipeline_mode = #tpu.pipeline_mode<synchronous>, transform_indices = @transform_2, window_bounds = array<i64: 2, 128>}, {pipeline_mode = #tpu.pipeline_mode<synchronous>, transform_indices = @transform_3, window_bounds = array<i64: 2, 32>}, {pipeline_mode = #tpu.pipeline_mode<synchronous>, transform_indices = @transform_4, window_bounds = array<i64: 32, 32>}, {pipeline_mode = #tpu.pipeline_mode<synchronous>, transform_indices = @transform_5, window_bounds = array<i64: 32, 1>}, {pipeline_mode = #tpu.pipeline_mode<synchronous>, transform_indices = @transform_6, window_bounds = array<i64: 3, 32>}, {transform_indices = @transform_7, window_bounds = array<i64: 8, 1>}]} {
    %c0 = arith.constant 0 : index
    %c0_0 = arith.constant 0 : index
    %0 = vector.load %arg1[%c0, %c0_0] : memref<8x1xf32, #tpu.memory_space<vmem>>, vector<8x1xf32>
    %c0_1 = arith.constant 0 : index
    %c0_2 = arith.constant 0 : index
    %1 = vector.load %arg2[%c0_1, %c0_2] : memref<8x1xf32, #tpu.memory_space<vmem>>, vector<8x1xf32>
    %c0_3 = arith.constant 0 : index
    %c0_4 = arith.constant 0 : index
    %2 = vector.load %arg3[%c0_3, %c0_4] : memref<2x128xf32, #tpu.memory_space<vmem>>, vector<1x128xf32>
    %c1 = arith.constant 1 : index
    %c0_5 = arith.constant 0 : index
    %3 = vector.load %arg3[%c1, %c0_5] : memref<2x128xf32, #tpu.memory_space<vmem>>, vector<1x128xf32>
    %c0_6 = arith.constant 0 : index
    %c0_7 = arith.constant 0 : index
    %4 = vector.load %arg4[%c0_6, %c0_7] : memref<2x32xf32, #tpu.memory_space<vmem>>, vector<2x32xf32>
    %c0_8 = arith.constant 0 : index
    %c0_9 = arith.constant 0 : index
    %5 = vector.load %arg5[%c0_8, %c0_9] : memref<32x32xf32, #tpu.memory_space<vmem>>, vector<32x32xf32>
    %c0_10 = arith.constant 0 : index
    %c0_11 = arith.constant 0 : index
    %6 = vector.load %arg6[%c0_10, %c0_11] : memref<32x1xf32, #tpu.memory_space<vmem>>, vector<32x1xf32>
    %c0_12 = arith.constant 0 : index
    %c0_13 = arith.constant 0 : index
    %7 = vector.load %arg7[%c0_12, %c0_13] : memref<3x32xf32, #tpu.memory_space<vmem>>, vector<1x32xf32>
    %c1_14 = arith.constant 1 : index
    %c0_15 = arith.constant 0 : index
    %8 = vector.load %arg7[%c1_14, %c0_15] : memref<3x32xf32, #tpu.memory_space<vmem>>, vector<1x32xf32>
    %c2 = arith.constant 2 : index
    %c0_16 = arith.constant 0 : index
    %9 = vector.load %arg7[%c2, %c0_16] : memref<3x32xf32, #tpu.memory_space<vmem>>, vector<1x1xf32>
    %cst = arith.constant 1.000000e+00 : f32
    %10 = vector.broadcast %cst : f32 to vector<1x128xf32>
    %11 = arith.addf %2, %10 : vector<1x128xf32>
    %12 = vector.broadcast %0 : vector<8x1xf32> to vector<8x128xf32>
    %13 = vector.broadcast %11 : vector<1x128xf32> to vector<8x128xf32>
    %14 = arith.mulf %12, %13 : vector<8x128xf32>
    %cst_17 = arith.constant 5.000000e-01 : f32
    %15 = vector.broadcast %cst_17 : f32 to vector<8x128xf32>
    %16 = arith.mulf %14, %15 : vector<8x128xf32>
    %17 = vector.extract_strided_slice %4 {offsets = [1, 0], sizes = [1, 32], strides = [1, 1]} : vector<2x32xf32> to vector<1x32xf32>
    %18 = vector.broadcast %1 : vector<8x1xf32> to vector<8x32xf32>
    %19 = vector.broadcast %17 : vector<1x32xf32> to vector<8x32xf32>
    %20 = arith.mulf %18, %19 : vector<8x32xf32>
    %21 = vector.broadcast %7 : vector<1x32xf32> to vector<8x32xf32>
    %22 = arith.addf %21, %20 : vector<8x32xf32>
    %23 = vector.shape_cast %16 : vector<8x128xf32> to vector<8x1x128xf32>
    %24 = vector.extract_strided_slice %4 {offsets = [0, 0], sizes = [1, 32], strides = [1, 1]} : vector<2x32xf32> to vector<1x32xf32>
    %25 = vector.shape_cast %24 : vector<1x32xf32> to vector<1x32x1xf32>
    %26 = vector.broadcast %23 : vector<8x1x128xf32> to vector<8x32x128xf32>
    %27 = vector.broadcast %25 : vector<1x32x1xf32> to vector<8x32x128xf32>
    %28 = arith.mulf %26, %27 : vector<8x32x128xf32>
    %29 = vector.shape_cast %22 : vector<8x32xf32> to vector<8x32x1xf32>
    %30 = vector.broadcast %29 : vector<8x32x1xf32> to vector<8x32x128xf32>
    %31 = arith.addf %28, %30 : vector<8x32x128xf32>
    %cst_18 = arith.constant 0.000000e+00 : f32
    %32 = vector.broadcast %cst_18 : f32 to vector<8x32x128xf32>
    %33 = arith.maximumf %31, %32 : vector<8x32x128xf32>
    %34 = vector.shape_cast %5 : vector<32x32xf32> to vector<1x32x32xf32>
    %35 = vector.shape_cast %34 : vector<1x32x32xf32> to vector<1x32x32xf32>
    %36 = vector.broadcast %35 : vector<1x32x32xf32> to vector<8x32x32xf32>
    "tpu.trace_start"() <{level = 10 : i32, message = "bij,bjs->bis"}> : () -> ()
    %cst_19 = arith.constant dense<0.000000e+00> : vector<8x32x128xf32>
    %37 = tpu.matmul %36, %33, %cst_19 {dimension_numbers = #tpu.dot_dimension_numbers<[2], [1], [1], [2], [0, 0, 0, 1, 1, 2], [0], [0]>} : vector<8x32x32xf32>, vector<8x32x128xf32>, vector<8x32x128xf32> -> vector<8x32x128xf32>
    "tpu.trace_stop"() : () -> ()
    %38 = vector.shape_cast %8 : vector<1x32xf32> to vector<1x32x1xf32>
    %39 = vector.broadcast %38 : vector<1x32x1xf32> to vector<8x32x128xf32>
    %40 = arith.addf %37, %39 : vector<8x32x128xf32>
    %cst_20 = arith.constant 0.000000e+00 : f32
    %41 = vector.broadcast %cst_20 : f32 to vector<8x32x128xf32>
    %42 = arith.maximumf %40, %41 : vector<8x32x128xf32>
    %cst_21 = arith.constant 5.000000e-01 : f32
    %43 = vector.broadcast %cst_21 : f32 to vector<8x1xf32>
    %44 = arith.mulf %0, %43 : vector<8x1xf32>
    %45 = vector.shape_cast %6 : vector<32x1xf32> to vector<1x32x1xf32>
    %46 = vector.broadcast %45 : vector<1x32x1xf32> to vector<8x32x128xf32>
    %47 = arith.mulf %42, %46 : vector<8x32x128xf32>
    %cst_22 = arith.constant dense<0.000000e+00> : vector<8x128xf32>
    %48 = vector.multi_reduction <add>, %47, %cst_22 [1] : vector<8x32x128xf32> to vector<8x128xf32>
    %49 = vector.broadcast %9 : vector<1x1xf32> to vector<8x128xf32>
    %50 = arith.addf %48, %49 : vector<8x128xf32>
    %cst_23 = arith.constant 0.000000e+00 : f32
    %51 = vector.broadcast %cst_23 : f32 to vector<8x128xf32>
    %52 = arith.cmpf ogt, %50, %51 : vector<8x128xf32>
    %cst_24 = arith.constant 1.000000e+00 : f32
    %53 = vector.broadcast %cst_24 : f32 to vector<8x128xf32>
    %54 = arith.addf %50, %53 : vector<8x128xf32>
    %55 = math.exp %50 : vector<8x128xf32>
    %56 = arith.select %52, %54, %55 : vector<8x128xi1>, vector<8x128xf32>
    %57 = vector.broadcast %3 : vector<1x128xf32> to vector<8x128xf32>
    %58 = arith.mulf %56, %57 : vector<8x128xf32>
    %cst_25 = arith.constant dense<0.000000e+00> : vector<8xf32>
    %59 = vector.multi_reduction <add>, %58, %cst_25 [1] : vector<8x128xf32> to vector<8xf32>
    %60 = vector.shape_cast %59 : vector<8xf32> to vector<8x1xf32>
    %61 = arith.mulf %60, %44 : vector<8x1xf32>
    %62 = arith.addf %61, %1 : vector<8x1xf32>
    %c0_26 = arith.constant 0 : index
    %c0_27 = arith.constant 0 : index
    %63 = vector.load %arg8[%c0_26, %c0_27] : memref<8x1xf32, #tpu.memory_space<vmem>>, vector<8x1xf32>
    tpu.vector_store %arg8[%c0_26, %c0_27], %62 {strides = array<i32>} : memref<8x1xf32, #tpu.memory_space<vmem>>, vector<8x1xf32>,
    return
  }
  func.func @transform_0(%arg0: i32) -> (i32, i32) {
    %c0_i32 = arith.constant 0 : i32
    %c0_i32_0 = arith.constant 0 : i32
    return %arg0, %c0_i32 : i32, i32
  }
  func.func @transform_1(%arg0: i32) -> (i32, i32) {
    %c0_i32 = arith.constant 0 : i32
    %c0_i32_0 = arith.constant 0 : i32
    return %arg0, %c0_i32 : i32, i32
  }
  func.func @transform_2(%arg0: i32) -> (i32, i32) {
    %c0_i32 = arith.constant 0 : i32
    %c0_i32_0 = arith.constant 0 : i32
    %c0_i32_1 = arith.constant 0 : i32
    return %c0_i32, %c0_i32_0 : i32, i32
  }
  func.func @transform_3(%arg0: i32) -> (i32, i32) {
    %c0_i32 = arith.constant 0 : i32
    %c0_i32_0 = arith.constant 0 : i32
    %c0_i32_1 = arith.constant 0 : i32
    return %c0_i32, %c0_i32_0 : i32, i32
  }
  func.func @transform_4(%arg0: i32) -> (i32, i32) {
    %c0_i32 = arith.constant 0 : i32
    %c0_i32_0 = arith.constant 0 : i32
    %c0_i32_1 = arith.constant 0 : i32
    return %c0_i32, %c0_i32_0 : i32, i32
  }
  func.func @transform_5(%arg0: i32) -> (i32, i32) {
    %c0_i32 = arith.constant 0 : i32
    %c0_i32_0 = arith.constant 0 : i32
    %c0_i32_1 = arith.constant 0 : i32
    return %c0_i32, %c0_i32_0 : i32, i32
  }
  func.func @transform_6(%arg0: i32) -> (i32, i32) {
    %c0_i32 = arith.constant 0 : i32
    %c0_i32_0 = arith.constant 0 : i32
    %c0_i32_1 = arith.constant 0 : i32
    return %c0_i32, %c0_i32_0 : i32, i32
  }
  func.func @transform_7(%arg0: i32) -> (i32, i32) {
    %c0_i32 = arith.constant 0 : i32
    %c0_i32_0 = arith.constant 0 : i32
    return %arg0, %c0_i32 : i32, i32
  }
}

</mosaic_0001>

<bundles_post_ra>
// kernel: monotonic_nn_forward.1
= control target key start
LH: loop header
LB: loop body
LE: loop exit
PB: predicated region body
PF: predicated region fallthrough
CT: control target
= control target key end

     0   :  { %v48_v0 = vlaneseq  ;;  %v1698_v1 = vmov 0   ;;  %vm445_vm0 = vcmask 261120   ;;  %v1699_v38 = vmov 1966171168   ;;  %s2072_s1 = inlined_call_operand.vmem [shape: f32[8,1], index: 1, kind: input, shape index: {}]   ;;  %s2073_s0 = inlined_call_operand.vmem [shape: f32[8,1], index: 0, kind: input, shape index: {}]   ;;  %s2074_s3 = inlined_call_operand.vmem [shape: f32[2,32], index: 3, kind: input, shape index: {}]   ;;  %s2075_s6 = inlined_call_operand.vmem [shape: f32[3,32], index: 6, kind: input, shape index: {}]   ;;  %s2076_s4 = inlined_call_operand.vmem [shape: f32[32,32], index: 4, kind: input, shape index: {}]   ;;  %s2077_s5 = inlined_call_operand.vmem [shape: f32[32,1], index: 5, kind: input, shape index: {}]   ;;  %s2078_s2 = inlined_call_operand.vmem [shape: f32[2,128], index: 2, kind: input, shape index: {}]   ;;  %s2079_s7 = inlined_call_operand.vmem [shape: f32[8,1], index: 7, kind: output, shape index: {}]  }
   0x1   :  { %1678 = vset.pattern.permute.xlu0 %v1698_v1  ;;  %v27_v2 = vld [vmem:[%s2072_s1] sm:$0xff]  ;;  %1679 = vset.pattern.permute.xlu1 %v1698_v1  ;;  %v37_v30 = vld [vmem:[%s2077_s5 + $0x10] sm:$0xff]  ;;  %v36_v31 = vld [vmem:[%s2077_s5 + $0x8] sm:$0xff]  ;;  %v72_v39 = vunpack.c.l.s4 %v1699_v38  ;;  %vm1368_vm3 = vcmask 1041409   ;;  %vm1371_vm5 = vcmask 1042434   ;;  %vm1374_vm7 = vcmask 1043459  }
   0x2   :  { %56 = vperm.xlu0 %1678, %v27_v2   ;;  %v1743_v3 = vshrl.u32 %v48_v0, 7  ;;  %v26_v4 = vld [vmem:[%s2073_s0] sm:$0xff]  ;;  %v38_v34 = vld [vmem:[%s2077_s5 + $0x18] sm:$0xff]  ;;  %v1833_v38 = vld [vmem:[%s2076_s4 + $0x8] sm:$0xff]  ;;  %vm1377_vm9 = vcmask 1044484   ;;  %vm1380_vm11 = vcmask 1045509  }
   0x3   :  { %v30_v5 = vld [vmem:[%s2074_s3] sm:$0x3]  ;;  %v41_v32 = vld [vmem:[%s2075_s6 + $0x2] sm:$0x1]  ;;  %v73_v41 = vunpack.c.0.s8 %v72_v39  ;;  %vm1383_vm13 = vcmask 1046534   ;;  %vm1386_vm15 = vcmask 1047559  }
   0x4   :  { %v1752_v6 = vsub.s32 0, %v1743_v3  ;;  %v61_v7 = vsub.s32 1, %v1743_v3  ;;  %v1399_v10 = vld [vmem:[%s2075_s6] ss:$0 sm:$0xff]  ;;  %v250_v13 = vsub.s32 2, %v1743_v3  ;;  %v269_v14 = vsub.s32 3, %v1743_v3  ;;  %1674 = vpush %v41_v32 }
   0x5   :  { %v288_v15 = vsub.s32 4, %v1743_v3  ;;  %v307_v16 = vsub.s32 5, %v1743_v3  ;;  %v326_v17 = vsub.s32 6, %v1743_v3  ;;  %v345_v19 = vsub.s32 7, %v1743_v3  ;;  %v1769_v28 = vld [vmem:[%s2076_s4] sm:$0xff] }
   0x6   :  { %45 = vperm.xlu0 %1678, %v26_v4   ;;  %v122_v8 = vrot.slane %v30_v5, %v1752_v6  ;;  %v62_v9 = vrot.slane %v30_v5, %v61_v7  ;;  %1506 = vmatprep.mubr.msk.f32.mxu0 %vm445_vm0, %v1769_v28  ;;  %v35_v29 = vld [vmem:[%s2077_s5] sm:$0xff]  ;;  %v1798_v43 = vsub.s32 %v73_v41, %v1743_v3  ;;  %v1838_v41 = vld [vmem:[%s2076_s4 + $0x10] sm:$0xff] }
   0x7   :  { %1520 = vmatprep.mubr.msk.f32.mxu1 %vm445_vm0, %v1769_v28  ;;  %v1400_v33 = vld [vmem:[%s2075_s6 + $0x1] ss:$0 sm:$0xff]  ;;  %v28_v35 = vld [vmem:[%s2078_s2] sm:$0x1] }
   0x8   :  { %124 = vbcast.lane.b32.xlu1 %v122_v8, 256  ;;  %v42_v36 = vadd.f32 1.0, %v28_v35 }
   0xa   :  { %132 = vbcast.lane.b32.xlu0 %v122_v8, 272  ;;  %v51_v37 = vrot.slane %v42_v36, %v1752_v6 }
   0xc   :  { %128 = vbcast.lane.b32.xlu1 %v122_v8, 264 }
  0x10   :  { %136 = vbcast.lane.b32.xlu1 %v122_v8, 280 }
  0x7a   :  { %v1802_v45 = vpop.permute.xlu1 %124 }
  0x7e   :  { %v1806_v47 = vpop.permute.xlu1 %128 }
  0x81   :  { %v57_v11 = vpop.permute.xlu0 %56 }
  0x82   :  { %v63_v12 = vmul.f32 %v62_v9, %v57_v11  ;;  %v1811_v52 = vpop.permute.xlu1 %136 }
  0x84   :  { %v68_v18 = vadd.f32 %v1399_v10, %v63_v12 }
  0x85   :  { %v46_v40 = vpop.permute.xlu0 %45 }
  0x86   :  { %v232_v20 = vrot.slane %v68_v18, %v61_v7  ;;  %v213_v21 = vrot.slane %v68_v18, %v1752_v6  ;;  %v251_v22 = vrot.slane %v68_v18, %v250_v13  ;;  %v270_v23 = vrot.slane %v68_v18, %v269_v14 }
  0x87   :  { %v289_v24 = vrot.slane %v68_v18, %v288_v15  ;;  %v308_v25 = vrot.slane %v68_v18, %v307_v16  ;;  %v327_v26 = vrot.slane %v68_v18, %v326_v17  ;;  %v346_v27 = vrot.slane %v68_v18, %v345_v19 }
  0x88   :  { %219 = vbcast.lane.b32.xlu1 %v213_v21, 264  ;;  %215 = vbcast.lane.b32.xlu0 %v213_v21, 256  ;;  %v52_v42 = vmul.f32 %v51_v37, %v46_v40 }
  0x89   :  { %v1813_v53 = vpop.permute.xlu0 %132 }
  0x8a   :  { %v1800_v44 = vmul.f32 0.5, %v52_v42 }
  0x8c   :  { %238 = vbcast.lane.b32.xlu1 %v232_v20, 264  ;;  %234 = vbcast.lane.b32.xlu0 %v232_v20, 256  ;;  %v77_v46 = vrot.slane %v1800_v44, %v1798_v43 }
  0x8e   :  { %v85_v48 = vcombine.high %v77_v46, %v77_v46  ;;  %v93_v49 = vrot.slane %v77_v46, %v1798_v43 }
  0x90   :  { %227 = vbcast.lane.b32.xlu1 %v213_v21, 280  ;;  %223 = vbcast.lane.b32.xlu0 %v213_v21, 272  ;;  %v107_v50 = vrot.slane %v85_v48, %v1798_v43  ;;  %v141_v51 = vrot.slane %v93_v49, %v1752_v6  ;;  %v115_v7 = vcombine.high %v93_v49, %v93_v49 }
  0x92   :  { %v145_v54 = vrot.slane %v107_v50, %v1752_v6  ;;  %v179_v55 = vmul.f32 %v141_v51, %v1806_v47  ;;  %v178_v56 = vmul.f32 %v141_v51, %v1802_v45  ;;  %v181_v10 = vmul.f32 %v141_v51, %v1811_v52 }
  0x93   :  { %v180_v12 = vmul.f32 %v141_v51, %v1813_v53  ;;  %v117_v17 = vcombine.high %v107_v50, %v107_v50  ;;  %v149_v18 = vrot.slane %v115_v7, %v1752_v6 }
  0x94   :  { %246 = vbcast.lane.b32.xlu1 %v232_v20, 280  ;;  %242 = vbcast.lane.b32.xlu0 %v232_v20, 272  ;;  %v183_v63 = vmul.f32 %v145_v54, %v1806_v47  ;;  %v182_v0 = vmul.f32 %v145_v54, %v1802_v45  ;;  %v185_v20 = vmul.f32 %v145_v54, %v1811_v52 }
  0x95   :  { %v153_v32 = vrot.slane %v117_v17, %v1752_v6  ;;  %v186_v35 = vmul.f32 %v149_v18, %v1802_v45 }
  0x97   :  { %v191_v46 = vmul.f32 %v153_v32, %v1806_v47  ;;  %v190_v50 = vmul.f32 %v153_v32, %v1802_v45 }
  0x98   :  { %257 = vbcast.lane.b32.xlu1 %v251_v22, 264  ;;  %253 = vbcast.lane.b32.xlu0 %v251_v22, 256 }
  0x9c   :  { %276 = vbcast.lane.b32.xlu1 %v270_v23, 264  ;;  %272 = vbcast.lane.b32.xlu0 %v270_v23, 256 }
  0xa0   :  { %265 = vbcast.lane.b32.xlu1 %v251_v22, 280  ;;  %261 = vbcast.lane.b32.xlu0 %v251_v22, 272 }
  0xa4   :  { %284 = vbcast.lane.b32.xlu1 %v270_v23, 280  ;;  %280 = vbcast.lane.b32.xlu0 %v270_v23, 272  ;;  %v184_v23 = vmul.f32 %v145_v54, %v1813_v53 }
  0xa8   :  { %295 = vbcast.lane.b32.xlu1 %v289_v24, 264  ;;  %291 = vbcast.lane.b32.xlu0 %v289_v24, 256 }
  0xac   :  { %314 = vbcast.lane.b32.xlu1 %v308_v25, 264  ;;  %310 = vbcast.lane.b32.xlu0 %v308_v25, 256 }
  0xb0   :  { %303 = vbcast.lane.b32.xlu1 %v289_v24, 280  ;;  %299 = vbcast.lane.b32.xlu0 %v289_v24, 272 }
  0xb4   :  { %322 = vbcast.lane.b32.xlu1 %v308_v25, 280  ;;  %318 = vbcast.lane.b32.xlu0 %v308_v25, 272 }
  0xb8   :  { %333 = vbcast.lane.b32.xlu1 %v327_v26, 264  ;;  %329 = vbcast.lane.b32.xlu0 %v327_v26, 256 }
  0xbc   :  { %352 = vbcast.lane.b32.xlu1 %v346_v27, 264  ;;  %348 = vbcast.lane.b32.xlu0 %v346_v27, 256 }
  0xc0   :  { %341 = vbcast.lane.b32.xlu1 %v327_v26, 280  ;;  %337 = vbcast.lane.b32.xlu0 %v327_v26, 272 }
  0xc4   :  { %360 = vbcast.lane.b32.xlu1 %v346_v27, 280  ;;  %356 = vbcast.lane.b32.xlu0 %v346_v27, 272 }
  0xc8   :  { %1173 = vperm.xlu0 %1678, %v35_v29   ;;  %1178 = vperm.xlu1 %1679, %v36_v31   ;;  %v70_v29 = vcombine.high %v1800_v44, %v1800_v44  ;;  %v187_v31 = vmul.f32 %v149_v18, %v1806_v47 }
  0xca   :  { %v84_v42 = vrot.slane %v70_v29, %v1798_v43 }
  0xcc   :  { %1183 = vperm.xlu0 %1678, %v37_v30   ;;  %431 = vbcast.lane.b32.xlu1 %v1400_v33, 256 }
  0xd0   :  { %435 = vbcast.lane.b32.xlu0 %v1400_v33, 264  ;;  %1188 = vperm.xlu1 %1679, %v38_v34  }
  0xd4   :  { %439 = vbcast.lane.b32.xlu0 %v1400_v33, 272  ;;  %443 = vbcast.lane.b32.xlu1 %v1400_v33, 280 }
  0xfa   :  { %v220_v57 = vpop.permute.xlu1 %219  ;;  %v216_v58 = vpop.permute.xlu0 %215 }
  0xfb   :  { %v363_v59 = vadd.f32 %v220_v57, %v179_v55  ;;  %v362_v60 = vadd.f32 %v216_v58, %v178_v56  ;;  %v1850_v55 = vld [vmem:[%s2076_s4 + $0x18] sm:$0xff]  ;;  %v86_v58 = vcombine.high %v84_v42, %v84_v42  ;;  %s1675_s4 = spop %1674 }
  0xfd   :  { %v395_v61 = vmax.f32 %v363_v59, 0.0  ;;  %v394_v62 = vmax.f32 %v362_v60, 0.0  ;;  %v1853_v59 = vrot.slane %v84_v42, %v1798_v43 }
  0xfe   :  { %v239_v1 = vpop.permute.xlu1 %238  ;;  %v235_v2 = vpop.permute.xlu0 %234 }
  0xff   :  { %v367_v3 = vadd.f32 %v239_v1, %v183_v63  ;;  %v366_v4 = vadd.f32 %v235_v2, %v182_v0  ;;  %v1610_v5 = vpack.c.bf16 %v395_v61, %v394_v62  ;;  %v189_v61 = vmul.f32 %v149_v18, %v1811_v52 }
 0x100   :  { %v188_v0 = vmul.f32 %v149_v18, %v1813_v53  ;;  %v157_v7 = vrot.slane %v1853_v59, %v1752_v6 }
 0x101   :  { %v399_v8 = vmax.f32 %v367_v3, 0.0  ;;  %v398_v9 = vmax.f32 %v366_v4, 0.0  ;;  %1611 = vmatprep.subr.bf16.mxu0 %v1610_v5 }
 0x102   :  { %v228_v11 = vpop.permute.xlu1 %227  ;;  %1613 = vmatpush3.bf16.msra.mxu0 %v1610_v5  ;;  %v224_v14 = vpop.permute.xlu0 %223  ;;  %v1866_v5 = vrot.slane %v86_v58, %v1798_v43  ;;  %v195_v17 = vmul.f32 %v157_v7, %v1806_v47 }
 0x103   :  { %v365_v13 = vadd.f32 %v228_v11, %v181_v10  ;;  %v1618_v15 = vpack.c.bf16 %v399_v8, %v398_v9  ;;  %v364_v16 = vadd.f32 %v224_v14, %v180_v12  ;;  %v193_v9 = vmul.f32 %v153_v32, %v1811_v52 }
 0x104   :  { %v192_v12 = vmul.f32 %v153_v32, %v1813_v53  ;;  %v161_v18 = vrot.slane %v1866_v5, %v1752_v6 }
 0x105   :  { %v397_v19 = vmax.f32 %v365_v13, 0.0  ;;  %1619 = vmatprep.subr.bf16.mxu1 %v1618_v15  ;;  %v396_v21 = vmax.f32 %v364_v16, 0.0 }
 0x106   :  { %v247_v22 = vpop.permute.xlu1 %246  ;;  %1621 = vmatpush3.bf16.msra.mxu1 %v1618_v15  ;;  %v243_v25 = vpop.permute.xlu0 %242 }
 0x107   :  { %v369_v24 = vadd.f32 %v247_v22, %v185_v20  ;;  %v1614_v26 = vpack.c.bf16 %v397_v19, %v396_v21  ;;  %v368_v27 = vadd.f32 %v243_v25, %v184_v23  ;;  %v194_v21 = vmul.f32 %v157_v7, %v1802_v45 }
 0x109   :  { %v401_v30 = vmax.f32 %v369_v24, 0.0  ;;  %v400_v33 = vmax.f32 %v368_v27, 0.0  ;;  %1615 = vmatprep.subr.bf16.mxu0 %v1614_v26  ;;  %v199_v27 = vmul.f32 %v161_v18, %v1806_v47 }
 0x10a   :  { %v258_v34 = vpop.permute.xlu1 %257  ;;  %1617 = vmatpush3.bf16.msra.mxu0 %v1614_v26  ;;  %v254_v37 = vpop.permute.xlu0 %253 }
 0x10b   :  { %v371_v36 = vadd.f32 %v258_v34, %v187_v31  ;;  %v1622_v39 = vpack.c.bf16 %v401_v30, %v400_v33  ;;  %v370_v40 = vadd.f32 %v254_v37, %v186_v35  ;;  %v198_v31 = vmul.f32 %v161_v18, %v1802_v45 }
 0x10d   :  { %v403_v44 = vmax.f32 %v371_v36, 0.0  ;;  %v402_v48 = vmax.f32 %v370_v40, 0.0  ;;  %1507 = vmatmul.mubr.msk.f32.vlgmr.msra.gmra.mrb[0].mxu0 %vm445_vm0, %v1833_v38  ;;  %1623 = vmatprep.subr.bf16.mxu1 %v1622_v39  ;;  %v116_v36 = vcombine.high %v1853_v59, %v1853_v59 }
 0x10e   :  { %v277_v49 = vpop.permute.xlu1 %276  ;;  %1625 = vmatpush3.bf16.msra.mxu1 %v1622_v39  ;;  %v273_v54 = vpop.permute.xlu0 %272  ;;  %1509 = vmatprep.mubr.msk.f32.mxu0 %vm445_vm0, %v1838_v41  ;;  %v197_v39 = vmul.f32 %v157_v7, %v1811_v52 }
 0x10f   :  { %v375_v51 = vadd.f32 %v277_v49, %v191_v46  ;;  %v1626_v56 = vpack.c.bf16 %v403_v44, %v402_v48  ;;  %v374_v57 = vadd.f32 %v273_v54, %v190_v50  ;;  %v196_v44 = vmul.f32 %v157_v7, %v1813_v53 }
 0x111   :  { %v407_v60 = vmax.f32 %v375_v51, 0.0  ;;  %v406_v62 = vmax.f32 %v374_v57, 0.0  ;;  %1510 = vmatmul.mubr.msk.f32.gmra.mrb[2].mxu0 %vm445_vm0, %v1850_v55  ;;  %1521 = vmatmul.mubr.msk.f32.vlgmr.msra.gmra.mrb[0].mxu1 %vm445_vm0, %v1833_v38  ;;  %v118_v51 = vcombine.high %v1866_v5, %v1866_v5  ;;  %v165_v57 = vrot.slane %v116_v36, %v1752_v6 }
 0x112   :  { %v266_v63 = vpop.permute.xlu1 %265  ;;  %1627 = vmatprep.subr.bf16.mxu0 %v1626_v56  ;;  %v262_v2 = vpop.permute.xlu0 %261  ;;  %1523 = vmatprep.mubr.msk.f32.mxu1 %vm445_vm0, %v1838_v41 }
 0x113   :  { %v373_v1 = vadd.f32 %v266_v63, %v189_v61  ;;  %v1634_v3 = vpack.c.bf16 %v407_v60, %v406_v62  ;;  %1629 = vmatpush3.bf16.msra.mxu0 %v1626_v56  ;;  %v372_v4 = vadd.f32 %v262_v2, %v188_v0  ;;  %1534 = vmatprep.mubr.msk.f32.mxu0 %vm445_vm0, %v1769_v28 }
 0x114   :  { %v201_v56 = vmul.f32 %v161_v18, %v1811_v52  ;;  %v200_v60 = vmul.f32 %v161_v18, %v1813_v53  ;;  %v203_v2 = vmul.f32 %v165_v57, %v1806_v47  ;;  %v202_v7 = vmul.f32 %v165_v57, %v1802_v45 }
 0x115   :  { %v405_v8 = vmax.f32 %v373_v1, 0.0  ;;  %v404_v10 = vmax.f32 %v372_v4, 0.0  ;;  %1524 = vmatmul.mubr.msk.f32.gmra.mrb[2].mxu1 %vm445_vm0, %v1850_v55  ;;  %1635 = vmatprep.subr.bf16.mxu1 %v1634_v3 }
 0x116   :  { %v285_v11 = vpop.permute.xlu1 %284  ;;  %1637 = vmatpush3.bf16.msra.mxu1 %v1634_v3  ;;  %v281_v14 = vpop.permute.xlu0 %280  ;;  %1548 = vmatprep.mubr.msk.f32.mxu1 %vm445_vm0, %v1769_v28  ;;  %v169_v3 = vrot.slane %v118_v51, %v1752_v6 }
 0x117   :  { %v377_v13 = vadd.f32 %v285_v11, %v193_v9  ;;  %v1630_v43 = vpack.c.bf16 %v405_v8, %v404_v10  ;;  %v376_v15 = vadd.f32 %v281_v14, %v192_v12 }
 0x118   :  { %v206_v6 = vmul.f32 %v169_v3, %v1802_v45  ;;  %v204_v45 = vmul.f32 %v165_v57, %v1813_v53 }
 0x119   :  { %v409_v16 = vmax.f32 %v377_v13, 0.0  ;;  %v408_v19 = vmax.f32 %v376_v15, 0.0  ;;  %1631 = vmatprep.subr.bf16.mxu0 %v1630_v43  ;;  %v207_v13 = vmul.f32 %v169_v3, %v1806_v47 }
 0x11a   :  { %v296_v20 = vpop.permute.xlu1 %295  ;;  %1633 = vmatpush3.bf16.msra.mxu0 %v1630_v43  ;;  %v292_v23 = vpop.permute.xlu0 %291 }
 0x11b   :  { %v379_v22 = vadd.f32 %v296_v20, %v195_v17  ;;  %v1638_v24 = vpack.c.bf16 %v409_v16, %v408_v19  ;;  %v378_v25 = vadd.f32 %v292_v23, %v194_v21  ;;  %v205_v20 = vmul.f32 %v165_v57, %v1811_v52 }
 0x11d   :  { %v411_v26 = vmax.f32 %v379_v22, 0.0  ;;  %v410_v29 = vmax.f32 %v378_v25, 0.0  ;;  %1535 = vmatmul.mubr.msk.f32.vlgmr.msra.gmra.mrb[4].mxu0 %vm445_vm0, %v1833_v38  ;;  %1639 = vmatprep.subr.bf16.mxu1 %v1638_v24 }
 0x11e   :  { %v315_v30 = vpop.permute.xlu1 %314  ;;  %1641 = vmatpush3.bf16.msra.mxu1 %v1638_v24  ;;  %v311_v33 = vpop.permute.xlu0 %310  ;;  %1537 = vmatprep.mubr.msk.f32.mxu0 %vm445_vm0, %v1838_v41 }
 0x11f   :  { %v383_v32 = vadd.f32 %v315_v30, %v199_v27  ;;  %v1642_v34 = vpack.c.bf16 %v411_v26, %v410_v29  ;;  %v382_v35 = vadd.f32 %v311_v33, %v198_v31  ;;  %v209_v27 = vmul.f32 %v169_v3, %v1811_v52 }
 0x120   :  { %v208_v31 = vmul.f32 %v169_v3, %v1813_v53 }
 0x121   :  { %v415_v37 = vmax.f32 %v383_v32, 0.0  ;;  %v414_v40 = vmax.f32 %v382_v35, 0.0  ;;  %1538 = vmatmul.mubr.msk.f32.gmra.mrb[6].mxu0 %vm445_vm0, %v1850_v55  ;;  %1549 = vmatmul.mubr.msk.f32.vlgmr.msra.gmra.mrb[4].mxu1 %vm445_vm0, %v1833_v38 }
 0x122   :  { %v304_v42 = vpop.permute.xlu1 %303  ;;  %1643 = vmatprep.subr.bf16.mxu0 %v1642_v34  ;;  %v300_v48 = vpop.permute.xlu0 %299  ;;  %1551 = vmatprep.mubr.msk.f32.mxu1 %vm445_vm0, %v1838_v41 }
 0x123   :  { %v381_v46 = vadd.f32 %v304_v42, %v197_v39  ;;  %v1650_v49 = vpack.c.bf16 %v415_v37, %v414_v40  ;;  %1645 = vmatpush3.bf16.msra.mxu0 %v1642_v34  ;;  %v380_v50 = vadd.f32 %v300_v48, %v196_v44  ;;  %1562 = vmatprep.mubr.msk.f32.mxu0 %vm445_vm0, %v1769_v28 }
 0x125   :  { %v413_v54 = vmax.f32 %v381_v46, 0.0  ;;  %v412_v58 = vmax.f32 %v380_v50, 0.0  ;;  %1552 = vmatmul.mubr.msk.f32.gmra.mrb[6].mxu1 %vm445_vm0, %v1850_v55  ;;  %1651 = vmatprep.subr.bf16.mxu1 %v1650_v49 }
 0x126   :  { %v323_v59 = vpop.permute.xlu1 %322  ;;  %1653 = vmatpush3.bf16.msra.mxu1 %v1650_v49  ;;  %v319_v62 = vpop.permute.xlu0 %318  ;;  %1576 = vmatprep.mubr.msk.f32.mxu1 %vm445_vm0, %v1769_v28 }
 0x127   :  { %v385_v61 = vadd.f32 %v323_v59, %v201_v56  ;;  %v1646_v63 = vpack.c.bf16 %v413_v54, %v412_v58  ;;  %v384_v0 = vadd.f32 %v319_v62, %v200_v60 }
 0x129   :  { %v417_v1 = vmax.f32 %v385_v61, 0.0  ;;  %v416_v4 = vmax.f32 %v384_v0, 0.0  ;;  %1647 = vmatprep.subr.bf16.mxu0 %v1646_v63 }
 0x12a   :  { %v334_v5 = vpop.permute.xlu1 %333  ;;  %1649 = vmatpush3.bf16.msra.mxu0 %v1646_v63  ;;  %v330_v9 = vpop.permute.xlu0 %329 }
 0x12b   :  { %v387_v8 = vadd.f32 %v334_v5, %v203_v2  ;;  %v1654_v10 = vpack.c.bf16 %v417_v1, %v416_v4  ;;  %v386_v11 = vadd.f32 %v330_v9, %v202_v7 }
 0x12d   :  { %v419_v12 = vmax.f32 %v387_v8, 0.0  ;;  %v418_v14 = vmax.f32 %v386_v11, 0.0  ;;  %1563 = vmatmul.mubr.msk.f32.vlgmr.msra.gmra.mrb[8].mxu0 %vm445_vm0, %v1833_v38  ;;  %1655 = vmatprep.subr.bf16.mxu1 %v1654_v10 }
 0x12e   :  { %v353_v43 = vpop.permute.xlu1 %352  ;;  %1657 = vmatpush3.bf16.msra.mxu1 %v1654_v10  ;;  %v349_v16 = vpop.permute.xlu0 %348  ;;  %1565 = vmatprep.mubr.msk.f32.mxu0 %vm445_vm0, %v1838_v41 }
 0x12f   :  { %v391_v15 = vadd.f32 %v353_v43, %v207_v13  ;;  %v1658_v17 = vpack.c.bf16 %v419_v12, %v418_v14  ;;  %v390_v18 = vadd.f32 %v349_v16, %v206_v6 }
 0x131   :  { %v423_v19 = vmax.f32 %v391_v15, 0.0  ;;  %v422_v47 = vmax.f32 %v390_v18, 0.0  ;;  %1566 = vmatmul.mubr.msk.f32.gmra.mrb[10].mxu0 %vm445_vm0, %v1850_v55  ;;  %1577 = vmatmul.mubr.msk.f32.vlgmr.msra.gmra.mrb[8].mxu1 %vm445_vm0, %v1833_v38 }
 0x132   :  { %v342_v21 = vpop.permute.xlu1 %341  ;;  %1659 = vmatprep.subr.bf16.mxu0 %v1658_v17  ;;  %v338_v23 = vpop.permute.xlu0 %337  ;;  %1579 = vmatprep.mubr.msk.f32.mxu1 %vm445_vm0, %v1838_v41 }
 0x133   :  { %v389_v22 = vadd.f32 %v342_v21, %v205_v20  ;;  %v1666_v24 = vpack.c.bf16 %v423_v19, %v422_v47  ;;  %1661 = vmatpush3.bf16.msra.mxu0 %v1658_v17  ;;  %v388_v25 = vadd.f32 %v338_v23, %v204_v45  ;;  %1590 = vmatprep.mubr.msk.f32.mxu0 %vm445_vm0, %v1769_v28 }
 0x135   :  { %v421_v26 = vmax.f32 %v389_v22, 0.0  ;;  %v420_v29 = vmax.f32 %v388_v25, 0.0  ;;  %1580 = vmatmul.mubr.msk.f32.gmra.mrb[10].mxu1 %vm445_vm0, %v1850_v55  ;;  %1667 = vmatprep.subr.bf16.mxu1 %v1666_v24 }
 0x136   :  { %v361_v30 = vpop.permute.xlu1 %360  ;;  %1669 = vmatpush3.bf16.msra.mxu1 %v1666_v24  ;;  %v357_v33 = vpop.permute.xlu0 %356  ;;  %1604 = vmatprep.mubr.msk.f32.mxu1 %vm445_vm0, %v1769_v28 }
 0x137   :  { %v393_v32 = vadd.f32 %v361_v30, %v209_v27  ;;  %v1662_v34 = vpack.c.bf16 %v421_v26, %v420_v29  ;;  %v392_v35 = vadd.f32 %v357_v33, %v208_v31 }
 0x139   :  { %v425_v36 = vmax.f32 %v393_v32, 0.0  ;;  %v424_v37 = vmax.f32 %v392_v35, 0.0  ;;  %1663 = vmatprep.subr.bf16.mxu0 %v1662_v34 }
 0x13a   :  { %1665 = vmatpush3.bf16.msra.mxu0 %v1662_v34 }
 0x13b   :  { %v1670_v52 = vpack.c.bf16 %v425_v36, %v424_v37 }
 0x13d   :  { %1591 = vmatmul.mubr.msk.f32.vlgmr.msra.gmra.mrb[12].mxu0 %vm445_vm0, %v1833_v38  ;;  %1671 = vmatprep.subr.bf16.mxu1 %v1670_v52 }
 0x13e   :  { %1673 = vmatpush3.bf16.msra.mxu1 %v1670_v52  ;;  %1593 = vmatprep.mubr.msk.f32.mxu0 %vm445_vm0, %v1838_v41 }
 0x141   :  { %1594 = vmatmul.mubr.msk.f32.gmra.mrb[14].mxu0 %vm445_vm0, %v1850_v55  ;;  %1605 = vmatmul.mubr.msk.f32.vlgmr.msra.gmra.mrb[12].mxu1 %vm445_vm0, %v1833_v38 }
 0x142   :  { %1607 = vmatprep.mubr.msk.f32.mxu1 %vm445_vm0, %v1838_v41 }
 0x145   :  { %1608 = vmatmul.mubr.msk.f32.gmra.mrb[14].mxu1 %vm445_vm0, %v1850_v55  ;;  %vm1393_vm0 = vcmask 7168  }
 0x147   :  { %v1944_v28 = vpop.permute.xlu1 %1178  ;;  %v1946_v53 = vpop.permute.xlu0 %1173 }
 0x14b   :  { %v1948_v39 = vpop.permute.xlu1 %431  ;;  %v1950_v40 = vpop.permute.xlu0 %1183 }
 0x14f   :  { %v1952_v42 = vpop.permute.xlu1 %1188  ;;  %v1954_v44 = vpop.permute.xlu0 %435 }
 0x153   :  { %v1958_v49 = vpop.permute.xlu1 %443  ;;  %v1960_v50 = vpop.permute.xlu0 %439 }
 0x1e0   :  { %v1508_v46 = vpop.f32.mrb[0].mxu0 }
 0x1e1   :  { %v524_v38 = vpop.f32.mrb[1].mxu0  ;;  %v530_v48 = vadd.f32 %v1508_v46, %v1954_v44 }
 0x1e2   :  { %v525_v41 = vadd.f32 %v524_v38, %v1948_v39 }
 0x1e3   :  { %v1139_v55 = vmax.f32 %v530_v48, 0.0 }
 0x1e4   :  { %v1138_v51 = vmax.f32 %v525_v41, 0.0  ;;  %v1511_v54 = vpop.f32.mrb[2].mxu0  ;;  %v1522_v56 = vpop.f32.mrb[0].mxu1 }
 0x1e5   :  { %v1192_v57 = vmul.f32 %v1944_v28, %v1139_v55  ;;  %v615_v58 = vadd.f32 %v1522_v56, %v1954_v44  ;;  %v534_v59 = vpop.f32.mrb[3].mxu0  ;;  %v609_v60 = vpop.f32.mrb[1].mxu1  ;;  %v540_v61 = vadd.f32 %v1511_v54, %v1958_v49  ;;  %v1984_v54 = vstv %s1675_s4 }
 0x1e6   :  { %v1191_v62 = vmul.f32 %v1946_v53, %v1138_v51  ;;  %v610_v63 = vadd.f32 %v609_v60, %v1948_v39  ;;  %v535_v0 = vadd.f32 %v534_v59, %v1960_v50 }
 0x1e7   :  { %v1143_v1 = vmax.f32 %v615_v58, 0.0  ;;  %v1141_v2 = vmax.f32 %v540_v61, 0.0 }
 0x1e8   :  { %v1142_v3 = vmax.f32 %v610_v63, 0.0  ;;  %v1140_v4 = vmax.f32 %v535_v0, 0.0  ;;  %v1223_v5 = vadd.f32 %v1192_v57, %v1191_v62  ;;  %v1525_v7 = vpop.f32.mrb[2].mxu1 }
 0x1e9   :  { %v1196_v8 = vmul.f32 %v1944_v28, %v1143_v1  ;;  %v625_v9 = vadd.f32 %v1525_v7, %v1958_v49  ;;  %v619_v10 = vpop.f32.mrb[3].mxu1  ;;  %v1194_v13 = vmul.f32 %v1952_v42, %v1141_v2 }
 0x1ea   :  { %v1195_v11 = vmul.f32 %v1946_v53, %v1142_v3  ;;  %v1193_v12 = vmul.f32 %v1950_v40, %v1140_v4  ;;  %v620_v14 = vadd.f32 %v619_v10, %v1960_v50 }
 0x1eb   :  { %v1145_v43 = vmax.f32 %v625_v9, 0.0 }
 0x1ec   :  { %v1232_v6 = vadd.f32 %v1196_v8, %v1195_v11  ;;  %v1224_v15 = vadd.f32 %v1223_v5, %v1193_v12  ;;  %v1144_v16 = vmax.f32 %v620_v14, 0.0 }
 0x1ed   :  { %v1198_v18 = vmul.f32 %v1952_v42, %v1145_v43 }
 0x1ee   :  { %v1225_v17 = vadd.f32 %v1224_v15, %v1194_v13  ;;  %v1197_v19 = vmul.f32 %v1950_v40, %v1144_v16 }
 0x1f0   :  { %v1226_v20 = vrot.slane %v1225_v17, 4  ;;  %v1233_v47 = vadd.f32 %v1232_v6, %v1197_v19  ;;  %v1536_v21 = vpop.f32.mrb[4].mxu0 }
 0x1f1   :  { %v700_v45 = vadd.f32 %v1536_v21, %v1954_v44  ;;  %v694_v22 = vpop.f32.mrb[5].mxu0 }
 0x1f2   :  { %v1234_v23 = vadd.f32 %v1233_v47, %v1198_v18  ;;  %v695_v24 = vadd.f32 %v694_v22, %v1948_v39  ;;  %v1227_v25 = vadd.f32 %v1226_v20, %v1225_v17 }
 0x1f3   :  { %v1147_v26 = vmax.f32 %v700_v45, 0.0 }
 0x1f4   :  { %v1235_v27 = vrot.slane %v1234_v23, 4  ;;  %v1146_v29 = vmax.f32 %v695_v24, 0.0  ;;  %v1539_v30 = vpop.f32.mrb[6].mxu0  ;;  %v1550_v31 = vpop.f32.mrb[4].mxu1  ;;  %v1228_v32 = vrot.slane %v1227_v25, 2 }
 0x1f5   :  { %v1200_v33 = vmul.f32 %v1944_v28, %v1147_v26  ;;  %v710_v34 = vadd.f32 %v1539_v30, %v1958_v49  ;;  %v785_v35 = vadd.f32 %v1550_v31, %v1954_v44  ;;  %v704_v36 = vpop.f32.mrb[7].mxu0  ;;  %v779_v37 = vpop.f32.mrb[5].mxu1 }
 0x1f6   :  { %v1236_v52 = vadd.f32 %v1235_v27, %v1234_v23  ;;  %v1199_v46 = vmul.f32 %v1946_v53, %v1146_v29  ;;  %v705_v38 = vadd.f32 %v704_v36, %v1960_v50  ;;  %v780_v48 = vadd.f32 %v779_v37, %v1948_v39 }
 0x1f7   :  { %v1149_v41 = vmax.f32 %v710_v34, 0.0  ;;  %v1151_v55 = vmax.f32 %v785_v35, 0.0  ;;  %v1229_v51 = vadd.f32 %v1228_v32, %v1227_v25 }
 0x1f8   :  { %v1237_v56 = vrot.slane %v1236_v52, 2  ;;  %v1241_v57 = vadd.f32 %v1200_v33, %v1199_v46  ;;  %v1148_v58 = vmax.f32 %v705_v38, 0.0  ;;  %v1150_v59 = vmax.f32 %v780_v48, 0.0  ;;  %v1553_v60 = vpop.f32.mrb[6].mxu1 }
 0x1f9   :  { %v1202_v61 = vmul.f32 %v1952_v42, %v1149_v41  ;;  %v1204_v62 = vmul.f32 %v1944_v28, %v1151_v55  ;;  %v795_v63 = vadd.f32 %v1553_v60, %v1958_v49  ;;  %v789_v0 = vpop.f32.mrb[7].mxu1  ;;  %v1230_v1 = vrot.slane %v1229_v51, 1 }
 0x1fa   :  { %v1238_v2 = vadd.f32 %v1237_v56, %v1236_v52  ;;  %v1201_v3 = vmul.f32 %v1950_v40, %v1148_v58  ;;  %v1203_v4 = vmul.f32 %v1946_v53, %v1150_v59  ;;  %v790_v5 = vadd.f32 %v789_v0, %v1960_v50  ;;  %v2011_v0 = vld [vmem:[%s2078_s2 + $0x1] ss:$0 sm:$0xff] }
 0x1fb   :  { %v1153_v7 = vmax.f32 %v795_v63, 0.0  ;;  %v1231_v8 = vadd.f32 %v1230_v1, %v1229_v51 }
 0x1fc   :  { %v1239_v9 = vrot.slane %v1238_v2, 1  ;;  %v1242_v10 = vadd.f32 %v1241_v57, %v1201_v3  ;;  %v1250_v11 = vadd.f32 %v1204_v62, %v1203_v4  ;;  %v1152_v12 = vmax.f32 %v790_v5, 0.0 }
 0x1fd   :  { %v1299_v13 = vadd.f32 %v1984_v54, %v1231_v8  ;;  %v1206_v6 = vmul.f32 %v1952_v42, %v1153_v7 }
 0x1fe   :  { %v1240_v14 = vadd.f32 %v1239_v9, %v1238_v2  ;;  %v1243_v43 = vadd.f32 %v1242_v10, %v1202_v61  ;;  %v1205_v15 = vmul.f32 %v1950_v40, %v1152_v12 }
 0x1ff   :  { %v1323_v16 = vmul.f32 1.442695, %v1299_v13  ;;  %v1315_v59 = vadd.f32 1.0, %v1299_v13  ;;  %vm1307_vm1 = vcmp.gt.f32.partialorder %v1299_v13, 0.0 }
 0x200   :  { %v1244_v17 = vrot.slane %v1243_v43, 4  ;;  %v1251_v18 = vadd.f32 %v1250_v11, %v1205_v15  ;;  %v1996_v19 = vadd.f32 %v1984_v54, %v1240_v14  ;;  %v1564_v20 = vpop.f32.mrb[8].mxu0 }
 0x201   :  { %1680 = vpow2.f32 %v1323_v16  ;;  %v870_v47 = vadd.f32 %v1564_v20, %v1954_v44  ;;  %v864_v21 = vpop.f32.mrb[9].mxu0 }
 0x202   :  { %v1245_v45 = vadd.f32 %v1244_v17, %v1243_v43  ;;  %v1252_v22 = vadd.f32 %v1251_v18, %v1206_v6  ;;  %v1325_v23 = vmul.f32 1.442695, %v1996_v19  ;;  %v865_v25 = vadd.f32 %v864_v21, %v1948_v39 }
 0x203   :  { %v1155_v24 = vmax.f32 %v870_v47, 0.0  ;;  %v1316_v13 = vadd.f32 1.0, %v1996_v19  ;;  %vm1308_vm2 = vcmp.gt.f32.partialorder %v1996_v19, 0.0 }
 0x204   :  { %v1246_v26 = vrot.slane %v1245_v45, 2  ;;  %v1253_v27 = vrot.slane %v1252_v22, 4  ;;  %v1567_v29 = vpop.f32.mrb[10].mxu0  ;;  %v1578_v30 = vpop.f32.mrb[8].mxu1  ;;  %1682 = vpow2.f32 %v1325_v23  ;;  %v1154_v32 = vmax.f32 %v865_v25, 0.0 }
 0x205   :  { %v1208_v31 = vmul.f32 %v1944_v28, %v1155_v24  ;;  %v880_v33 = vadd.f32 %v1567_v29, %v1958_v49  ;;  %v874_v34 = vpop.f32.mrb[11].mxu0  ;;  %v949_v35 = vpop.f32.mrb[9].mxu1  ;;  %v955_v52 = vadd.f32 %v1578_v30, %v1954_v44 }
 0x206   :  { %v1247_v36 = vadd.f32 %v1246_v26, %v1245_v45  ;;  %v1254_v37 = vadd.f32 %v1253_v27, %v1252_v22  ;;  %v875_v46 = vadd.f32 %v874_v34, %v1960_v50  ;;  %v1207_v38 = vmul.f32 %v1946_v53, %v1154_v32 }
 0x207   :  { %v1157_v48 = vmax.f32 %v880_v33, 0.0  ;;  %v950_v41 = vadd.f32 %v949_v35, %v1948_v39  ;;  %v1159_v56 = vmax.f32 %v955_v52, 0.0 }
 0x208   :  { %v1248_v55 = vrot.slane %v1247_v36, 1  ;;  %v1255_v51 = vrot.slane %v1254_v37, 2  ;;  %v1156_v57 = vmax.f32 %v875_v46, 0.0  ;;  %v1581_v58 = vpop.f32.mrb[10].mxu1  ;;  %v1259_v60 = vadd.f32 %v1208_v31, %v1207_v38 }
 0x209   :  { %v1158_v61 = vmax.f32 %v950_v41, 0.0  ;;  %v965_v62 = vadd.f32 %v1581_v58, %v1958_v49  ;;  %v959_v63 = vpop.f32.mrb[11].mxu1  ;;  %v1212_v3 = vmul.f32 %v1944_v28, %v1159_v56  ;;  %v1210_v7 = vmul.f32 %v1952_v42, %v1157_v48 }
 0x20a   :  { %v1249_v1 = vadd.f32 %v1248_v55, %v1247_v36  ;;  %v1256_v2 = vadd.f32 %v1255_v51, %v1254_v37  ;;  %v1209_v4 = vmul.f32 %v1950_v40, %v1156_v57  ;;  %v960_v9 = vadd.f32 %v959_v63, %v1960_v50 }
 0x20b   :  { %v1681_v5 = vpop.eup %1680  ;;  %v1211_v8 = vmul.f32 %v1946_v53, %v1158_v61  ;;  %v1161_v6 = vmax.f32 %v965_v62, 0.0 }
 0x20c   :  { %v1257_v10 = vrot.slane %v1256_v2, 1  ;;  %v2019_v11 = vadd.f32 %v1984_v54, %v1249_v1  ;;  %v1260_v12 = vadd.f32 %v1259_v60, %v1209_v4  ;;  %v1339_v14 = vsel %vm1307_vm1, %v1315_v59, %v1681_v5 }
 0x20d   :  { %v1268_v43 = vadd.f32 %v1212_v3, %v1211_v8  ;;  %v1160_v15 = vmax.f32 %v960_v9, 0.0  ;;  %v1351_v16 = vmul.f32 %v2011_v0, %v1339_v14  ;;  %v1214_v25 = vmul.f32 %v1952_v42, %v1161_v6 }
 0x20e   :  { %v1258_v17 = vadd.f32 %v1257_v10, %v1256_v2  ;;  %v1327_v18 = vmul.f32 1.442695, %v2019_v11  ;;  %v1261_v20 = vadd.f32 %v1260_v12, %v1210_v7  ;;  %v1683_v47 = vpop.eup %1682  ;;  %v1317_v36 = vadd.f32 1.0, %v2019_v11 }
 0x20f   :  { %v1213_v21 = vmul.f32 %v1950_v40, %v1160_v15  ;;  %v1340_v24 = vsel %vm1308_vm2, %v1316_v13, %v1683_v47  ;;  %vm1309_vm4 = vcmp.gt.f32.partialorder %v2019_v11, 0.0 }
 0x210   :  { %v2027_v45 = vadd.f32 %v1984_v54, %v1258_v17  ;;  %1684 = vpow2.f32 %v1327_v18  ;;  %v1262_v22 = vrot.slane %v1261_v20, 4  ;;  %v1592_v23 = vpop.f32.mrb[12].mxu0  ;;  %v1352_v30 = vmul.f32 %v2011_v0, %v1340_v24 }
 0x211   :  { %v1269_v26 = vadd.f32 %v1268_v43, %v1213_v21  ;;  %v1040_v27 = vadd.f32 %v1592_v23, %v1954_v44  ;;  %v1034_v29 = vpop.f32.mrb[13].mxu0 }
 0x212   :  { %v1329_v31 = vmul.f32 1.442695, %v2027_v45  ;;  %v1263_v19 = vadd.f32 %v1262_v22, %v1261_v20  ;;  %v1035_v32 = vadd.f32 %v1034_v29, %v1948_v39  ;;  %v1367_v35 = vrot.slane %v1352_v30, 7 }
 0x213   :  { %v1270_v33 = vadd.f32 %v1269_v26, %v1214_v25  ;;  %v1163_v34 = vmax.f32 %v1040_v27, 0.0  ;;  %v1318_v11 = vadd.f32 1.0, %v2027_v45  ;;  %vm1310_vm6 = vcmp.gt.f32.partialorder %v2027_v45, 0.0 }
 0x214   :  { %1686 = vpow2.f32 %v1329_v31  ;;  %v1264_v37 = vrot.slane %v1263_v19, 2  ;;  %v1162_v52 = vmax.f32 %v1035_v32, 0.0  ;;  %v1595_v46 = vpop.f32.mrb[14].mxu0  ;;  %v1606_v38 = vpop.f32.mrb[12].mxu1  ;;  %v1369_v2 = vsel %vm1368_vm3, %v1367_v35, %v1351_v16 }
 0x215   :  { %v1271_v48 = vrot.slane %v1270_v33, 4  ;;  %v1216_v41 = vmul.f32 %v1944_v28, %v1163_v34  ;;  %v1050_v55 = vadd.f32 %v1595_v46, %v1958_v49  ;;  %v1125_v51 = vadd.f32 %v1606_v38, %v1954_v44  ;;  %v1044_v56 = vpop.f32.mrb[15].mxu0  ;;  %v1119_v57 = vpop.f32.mrb[13].mxu1 }
 0x216   :  { %v1265_v58 = vadd.f32 %v1264_v37, %v1263_v19  ;;  %v1215_v59 = vmul.f32 %v1946_v53, %v1162_v52  ;;  %v1045_v60 = vadd.f32 %v1044_v56, %v1960_v50  ;;  %v1120_v61 = vadd.f32 %v1119_v57, %v1948_v39 }
 0x217   :  { %v1272_v62 = vadd.f32 %v1271_v48, %v1270_v33  ;;  %v1165_v63 = vmax.f32 %v1050_v55, 0.0  ;;  %v1167_v1 = vmax.f32 %v1125_v51, 0.0 }
 0x218   :  { %v1266_v3 = vrot.slane %v1265_v58, 1  ;;  %v1277_v4 = vadd.f32 %v1216_v41, %v1215_v59  ;;  %v1164_v5 = vmax.f32 %v1045_v60, 0.0  ;;  %v1166_v7 = vmax.f32 %v1120_v61, 0.0  ;;  %v1609_v8 = vpop.f32.mrb[14].mxu1 }
 0x219   :  { %v1273_v44 = vrot.slane %v1272_v62, 2  ;;  %v1220_v9 = vmul.f32 %v1944_v28, %v1167_v1  ;;  %v1135_v10 = vadd.f32 %v1609_v8, %v1958_v49  ;;  %v1129_v12 = vpop.f32.mrb[15].mxu1  ;;  %v1218_v17 = vmul.f32 %v1952_v42, %v1165_v63 }
 0x21a   :  { %v1685_v14 = vpop.eup %1684  ;;  %v1267_v39 = vadd.f32 %v1266_v3, %v1265_v58  ;;  %v1217_v43 = vmul.f32 %v1950_v40, %v1164_v5  ;;  %v1219_v6 = vmul.f32 %v1946_v53, %v1166_v7  ;;  %v1130_v15 = vadd.f32 %v1129_v12, %v1960_v50 }
 0x21b   :  { %v1274_v16 = vadd.f32 %v1273_v44, %v1272_v62  ;;  %v1169_v13 = vmax.f32 %v1135_v10, 0.0  ;;  %v1341_v18 = vsel %vm1309_vm4, %v1317_v36, %v1685_v14 }
 0x21c   :  { %v1303_v28 = vadd.f32 %v1984_v54, %v1267_v39  ;;  %v1278_v20 = vadd.f32 %v1277_v4, %v1217_v43  ;;  %v1286_v49 = vadd.f32 %v1220_v9, %v1219_v6  ;;  %v1168_v47 = vmax.f32 %v1130_v15, 0.0 }
 0x21d   :  { %v1275_v21 = vrot.slane %v1274_v16, 1  ;;  %v1353_v22 = vmul.f32 %v2011_v0, %v1341_v18  ;;  %v1222_v26 = vmul.f32 %v1952_v42, %v1169_v13 }
 0x21e   :  { %v1687_v23 = vpop.eup %1686  ;;  %v1331_v53 = vmul.f32 1.442695, %v1303_v28  ;;  %v1279_v24 = vadd.f32 %v1278_v20, %v1218_v17  ;;  %v1221_v50 = vmul.f32 %v1950_v40, %v1168_v47  ;;  %v1319_v41 = vadd.f32 1.0, %v1303_v28 }
 0x21f   :  { %v1276_v25 = vadd.f32 %v1275_v21, %v1274_v16  ;;  %v1342_v27 = vsel %vm1310_vm6, %v1318_v11, %v1687_v23  ;;  %v1370_v29 = vrot.slane %v1353_v22, 6  ;;  %vm1311_vm8 = vcmp.gt.f32.partialorder %v1303_v28, 0.0  ;;  %v1696_v28 = vld [vmem:[%s2073_s0] sm:$0xff] }
 0x220   :  { %1688 = vpow2.f32 %v1331_v53  ;;  %v1280_v30 = vrot.slane %v1279_v24, 4  ;;  %v1287_v31 = vadd.f32 %v1286_v49, %v1221_v50  ;;  %v1354_v19 = vmul.f32 %v2011_v0, %v1342_v27  ;;  %v1697_v21 = vld [vmem:[%s2072_s1] sm:$0xff] }
 0x221   :  { %v1304_v32 = vadd.f32 %v1984_v54, %v1276_v25  ;;  %v1372_v33 = vsel %vm1371_vm5, %v1370_v29, %v1369_v2  ;;  %v1170_v20 = vmul.f32 0.5, %v1696_v28 }
 0x222   :  { %v1281_v34 = vadd.f32 %v1280_v30, %v1279_v24  ;;  %v1288_v35 = vadd.f32 %v1287_v31, %v1222_v26  ;;  %v1373_v36 = vrot.slane %v1354_v19, 5 }
 0x223   :  { %v1333_v40 = vmul.f32 1.442695, %v1304_v32  ;;  %v1320_v63 = vadd.f32 1.0, %v1304_v32  ;;  %vm1312_vm10 = vcmp.gt.f32.partialorder %v1304_v32, 0.0 }
 0x224   :  { %v1282_v37 = vrot.slane %v1281_v34, 2  ;;  %v1289_v45 = vrot.slane %v1288_v35, 4  ;;  %v1375_v52 = vsel %vm1374_vm7, %v1373_v36, %v1372_v33 }
 0x225   :  { %1690 = vpow2.f32 %v1333_v40 }
 0x226   :  { %v1283_v42 = vadd.f32 %v1282_v37, %v1281_v34  ;;  %v1290_v46 = vadd.f32 %v1289_v45, %v1288_v35 }
 0x228   :  { %v1284_v38 = vrot.slane %v1283_v42, 1  ;;  %v1291_v48 = vrot.slane %v1290_v46, 2 }
 0x22a   :  { %v1689_v55 = vpop.eup %1688  ;;  %v1285_v51 = vadd.f32 %v1284_v38, %v1283_v42  ;;  %v1292_v56 = vadd.f32 %v1291_v48, %v1290_v46 }
 0x22b   :  { %v1343_v57 = vsel %vm1311_vm8, %v1319_v41, %v1689_v55 }
 0x22c   :  { %v1305_v58 = vadd.f32 %v1984_v54, %v1285_v51  ;;  %v1293_v59 = vrot.slane %v1292_v56, 1  ;;  %v1355_v60 = vmul.f32 %v2011_v0, %v1343_v57 }
 0x22e   :  { %v1335_v61 = vmul.f32 1.442695, %v1305_v58  ;;  %v1294_v62 = vadd.f32 %v1293_v59, %v1292_v56  ;;  %v1376_v2 = vrot.slane %v1355_v60, 4  ;;  %v1321_v10 = vadd.f32 1.0, %v1305_v58 }
 0x22f   :  { %v1691_v1 = vpop.eup %1690  ;;  %vm1313_vm12 = vcmp.gt.f32.partialorder %v1305_v58, 0.0 }
 0x230   :  { %1692 = vpow2.f32 %v1335_v61  ;;  %v1306_v3 = vadd.f32 %v1984_v54, %v1294_v62  ;;  %v1344_v4 = vsel %vm1312_vm10, %v1320_v63, %v1691_v1  ;;  %v1378_v7 = vsel %vm1377_vm9, %v1376_v2, %v1375_v52 }
 0x231   :  { %v1356_v5 = vmul.f32 %v2011_v0, %v1344_v4 }
 0x232   :  { %v1337_v8 = vmul.f32 1.442695, %v1306_v3  ;;  %v1322_v43 = vadd.f32 1.0, %v1306_v3  ;;  %vm1314_vm14 = vcmp.gt.f32.partialorder %v1306_v3, 0.0 }
 0x233   :  { %v1379_v44 = vrot.slane %v1356_v5, 3 }
 0x234   :  { %1694 = vpow2.f32 %v1337_v8 }
 0x235   :  { %v1381_v9 = vsel %vm1380_vm11, %v1379_v44, %v1378_v7 }
 0x23a   :  { %v1693_v12 = vpop.eup %1692 }
 0x23b   :  { %v1345_v14 = vsel %vm1313_vm12, %v1321_v10, %v1693_v12 }
 0x23c   :  { %v1357_v39 = vmul.f32 %v2011_v0, %v1345_v14 }
 0x23e   :  { %v1695_v6 = vpop.eup %1694  ;;  %v1382_v54 = vrot.slane %v1357_v39, 2 }
 0x23f   :  { %v1346_v15 = vsel %vm1314_vm14, %v1322_v43, %v1695_v6 }
 0x240   :  { %v1358_v16 = vmul.f32 %v2011_v0, %v1346_v15  ;;  %v1384_v17 = vsel %vm1383_vm13, %v1382_v54, %v1381_v9 }
 0x242   :  { %v1385_v13 = vrot.slane %v1358_v16, 1 }
 0x244   :  { %v1387_v18 = vsel %vm1386_vm15, %v1385_v13, %v1384_v17 }
 0x245   :  { %1389 = vadd.xlane.f32.xlu0 %v1387_v18 }
 0x2d2   :  { %v1390_v49 = vpop.xlane.xlu0 %1389 }
 0x2d3   :  { %v1391_v47 = vmul.f32 %v1390_v49, %v1170_v20 }
 0x2d5   :  { %v1392_v11 = vadd.f32 %v1697_v21, %v1391_v47 }
 0x2d7   :  { %1394 = vst.msk [vmem:[%s2079_s7] sm:$0xff] %vm1393_vm0, %v1392_v11 }

</bundles_post_ra>
